<compile_context>
chip_gen: v7x
topology: tpu7x:2x2x1
jax: 0.10.0
libtpu: 0.0.40
codegen_flags: <defaults>
</compile_context>

<pallas_src>
import functools

import jax
import jax.numpy as jnp
from jax.experimental import pallas as pl
from jax.experimental.pallas import tpu as pltpu


def _pick_c_block(C, H, W, s, itemsize, vmem_budget_bytes=8 * 1024 * 1024):
    """Largest divisor of C whose (lane-padded, double-buffered) in+out blocks
    fit the VMEM budget; prefer >=2 chunks so the second grid axis exists even
    at B=1 (megacore sharding / pipeline depth)."""
    Hs, Ws = H // s, W // s
    lane_in = -(-(s * W) // 128) * 128     # VMEM minor-dim padding to 128 lanes
    lane_out = -(-Ws // 128) * 128

    def padded_block_bytes(cb):
        in_b = cb * Hs * lane_in * itemsize
        out_b = s * s * cb * Hs * lane_out * itemsize
        return 2 * (in_b + out_b)          # x2 for double-buffered pipelining

    def shape_ok(cb):
        # Second-minor block dim must be a multiple of 8 (or the full dim).
        return cb == C or (cb * Hs) % 8 == 0

    divisors = [d for d in range(C, 0, -1) if C % d == 0]
    fits = [d for d in divisors
            if shape_ok(d) and padded_block_bytes(d) <= vmem_budget_bytes]
    if not fits:
        return C
    multi = [d for d in fits if d < C]
    return multi[0] if multi else fits[0]


def _reorg_kernel(x_ref, o_ref, *, stride, W, Ws):
    """One (batch, channel-chunk) tile per grid step.

    x_ref : (1, c_block*Hs, s*W)      rows = (c, Y), lanes q = i*W + w
    o_ref : (1, s*s, c_block*Hs, Ws)  axis 1 is k = i*s + j
    """
    s = stride
    x = x_ref[0]                                        # (c_block*Hs, s*W)

    # Tiny exact 0/1 lane-selection matrices built in-register from iota:
    #   sel[q, X] = 1  iff  q == i*W + X*s + j
    # Exactly one nonzero product per output element -> bit-exact for floats.
    q_idx = jax.lax.broadcasted_iota(jnp.int32, (s * W, Ws), 0)
    x_idx = jax.lax.broadcasted_iota(jnp.int32, (s * W, Ws), 1)

    for i in range(s):
        for j in range(s):
            sel = (q_idx == i * W + x_idx * s + j).astype(x.dtype)
            blk = jnp.dot(x, sel, preferred_element_type=jnp.float32)
            o_ref[0, i * s + j, :, :] = blk.astype(o_ref.dtype)


def reorg(x, stride=2, c_block=None):
    """out[b, (i*s+j)*C + c, Y, X] = x[b, c, Y*s + i, X*s + j]."""
    B, C, H, W = x.shape
    s = stride
    assert H % s == 0 and W % s == 0
    Hs, Ws = H // s, W // s

    if c_block is None:
        c_block = _pick_c_block(C, H, W, s, jnp.dtype(x.dtype).itemsize)
    assert C % c_block == 0
    n_cb = C // c_block

    # Free view: (B, C, H, W) -> (B, C*Hs, s*W); element (b, c*Hs+Y, i*W+w).
    x3 = x.reshape(B, C * Hs, s * W)

    out4 = pl.pallas_call(
        functools.partial(_reorg_kernel, stride=s, W=W, Ws=Ws),
        out_shape=jax.ShapeDtypeStruct((B, s * s, C * Hs, Ws), x.dtype),
        grid=(B, n_cb),
        in_specs=[
            pl.BlockSpec((1, c_block * Hs, s * W), lambda b, cb: (b, cb, 0)),
        ],
        out_specs=pl.BlockSpec((1, s * s, c_block * Hs, Ws),
                               lambda b, cb: (b, 0, cb, 0)),
        compiler_params=pltpu.CompilerParams(
            dimension_semantics=("parallel", "parallel")),
    )(x3)

    # Free view: (B, s*s, C*Hs, Ws) -> (B, s*s*C, Hs, Ws).
    return out4.reshape(B, s * s * C, Hs, Ws)


def reorg_reference(x, stride=2):
    """Pure-JAX reference matching the PyTorch ReorgLayer exactly."""
    B, C, H, W = x.shape
    s = stride
    y = x.reshape(B, C, H // s, s, W // s, s)
    y = jnp.transpose(y, (0, 3, 5, 1, 2, 4))  # (B, i, j, C, Hs, Ws)
    return y.reshape(B, s * s * C, H // s, W // s)


if __name__ == "__main__":
    key = jax.random.PRNGKey(0)
    B, C, H, W = 2, 4, 16, 16
    stride = 2

    x = jax.random.normal(key, (B, C, H, W), dtype=jnp.float32)

    out = jax.block_until_ready(reorg(x, stride=stride))
    ref = jax.block_until_ready(reorg_reference(x, stride=stride))

    assert out.shape == (B, stride * stride * C, H // stride, W // stride), out.shape
    assert jnp.array_equal(out, ref), "mismatch vs reference"

    print("KERNEL_OK")
</pallas_src>

<mosaic_0001>
module attributes {stable_mosaic.version = 11 : i64} {
  func.func @_reorg_kernel(%arg0: i32, %arg1: i32, %arg2: memref<1x16x32xf32, #tpu.memory_space<vmem>>, %arg3: memref<1x4x16x8xf32, #tpu.memory_space<vmem>>) attributes {dimension_semantics = [#tpu.dimension_semantics<parallel>, #tpu.dimension_semantics<parallel>], iteration_bounds = array<i64: 2, 2>, scalar_prefetch = 0 : i64, scratch_operands = 0 : i64, tpu.core_type = #tpu.core_type<tc>, window_params = [{transform_indices = @transform_0, window_bounds = array<i64: 1, 16, 32>}, {transform_indices = @transform_1, window_bounds = array<i64: 1, 4, 16, 8>}]} {
    %c0 = arith.constant 0 : index
    %c0_0 = arith.constant 0 : index
    %c0_1 = arith.constant 0 : index
    %0 = vector.load %arg2[%c0, %c0_0, %c0_1] : memref<1x16x32xf32, #tpu.memory_space<vmem>>, vector<1x16x32xf32>
    %1 = vector.shape_cast %0 : vector<1x16x32xf32> to vector<16x32xf32>
    %2 = tpu.iota {dimensions = array<i32: 0>} : vector<32x8xi32>
    %3 = tpu.iota {dimensions = array<i32: 1>} : vector<32x8xi32>
    %c2_i32 = arith.constant 2 : i32
    %4 = vector.broadcast %c2_i32 : i32 to vector<32x8xi32>
    %5 = arith.muli %3, %4 : vector<32x8xi32>
    %c0_i32 = arith.constant 0 : i32
    %6 = vector.broadcast %c0_i32 : i32 to vector<32x8xi32>
    %7 = arith.addi %6, %5 : vector<32x8xi32>
    %c0_i32_2 = arith.constant 0 : i32
    %8 = vector.broadcast %c0_i32_2 : i32 to vector<32x8xi32>
    %9 = arith.addi %7, %8 : vector<32x8xi32>
    %10 = arith.cmpi eq, %2, %9 : vector<32x8xi32>
    %11 = arith.extui %10 : vector<32x8xi1> to vector<32x8xi32>
    %12 = arith.sitofp %11 : vector<32x8xi32> to vector<32x8xf32>
    %cst = arith.constant dense<0.000000e+00> : vector<16x8xf32>
    %13 = tpu.matmul %1, %12, %cst {dimension_numbers = #tpu.dot_dimension_numbers<[1], [0], [0], [1], [0, 0, 1, 1], [], []>} : vector<16x32xf32>, vector<32x8xf32>, vector<16x8xf32> -> vector<16x8xf32>
    %c0_3 = arith.constant 0 : index
    %c0_4 = arith.constant 0 : index
    %c0_5 = arith.constant 0 : index
    %c0_6 = arith.constant 0 : index
    %14 = vector.load %arg3[%c0_3, %c0_4, %c0_5, %c0_6] : memref<1x4x16x8xf32, #tpu.memory_space<vmem>>, vector<1x1x16x8xf32>
    %15 = vector.shape_cast %14 : vector<1x1x16x8xf32> to vector<16x8xf32>
    %16 = vector.shape_cast %13 : vector<16x8xf32> to vector<1x1x16x8xf32>
    tpu.vector_store %arg3[%c0_3, %c0_4, %c0_5, %c0_6], %16 {strides = array<i32>} : memref<1x4x16x8xf32, #tpu.memory_space<vmem>>, vector<1x1x16x8xf32>,
    %c2_i32_7 = arith.constant 2 : i32
    %17 = vector.broadcast %c2_i32_7 : i32 to vector<32x8xi32>
    %18 = arith.muli %3, %17 : vector<32x8xi32>
    %c0_i32_8 = arith.constant 0 : i32
    %19 = vector.broadcast %c0_i32_8 : i32 to vector<32x8xi32>
    %20 = arith.addi %19, %18 : vector<32x8xi32>
    %c1_i32 = arith.constant 1 : i32
    %21 = vector.broadcast %c1_i32 : i32 to vector<32x8xi32>
    %22 = arith.addi %20, %21 : vector<32x8xi32>
    %23 = arith.cmpi eq, %2, %22 : vector<32x8xi32>
    %24 = arith.extui %23 : vector<32x8xi1> to vector<32x8xi32>
    %25 = arith.sitofp %24 : vector<32x8xi32> to vector<32x8xf32>
    %cst_9 = arith.constant dense<0.000000e+00> : vector<16x8xf32>
    %26 = tpu.matmul %1, %25, %cst_9 {dimension_numbers = #tpu.dot_dimension_numbers<[1], [0], [0], [1], [0, 0, 1, 1], [], []>} : vector<16x32xf32>, vector<32x8xf32>, vector<16x8xf32> -> vector<16x8xf32>
    %c0_10 = arith.constant 0 : index
    %c1 = arith.constant 1 : index
    %c0_11 = arith.constant 0 : index
    %c0_12 = arith.constant 0 : index
    %27 = vector.load %arg3[%c0_10, %c1, %c0_11, %c0_12] : memref<1x4x16x8xf32, #tpu.memory_space<vmem>>, vector<1x1x16x8xf32>
    %28 = vector.shape_cast %27 : vector<1x1x16x8xf32> to vector<16x8xf32>
    %29 = vector.shape_cast %26 : vector<16x8xf32> to vector<1x1x16x8xf32>
    tpu.vector_store %arg3[%c0_10, %c1, %c0_11, %c0_12], %29 {strides = array<i32>} : memref<1x4x16x8xf32, #tpu.memory_space<vmem>>, vector<1x1x16x8xf32>,
    %c2_i32_13 = arith.constant 2 : i32
    %30 = vector.broadcast %c2_i32_13 : i32 to vector<32x8xi32>
    %31 = arith.muli %3, %30 : vector<32x8xi32>
    %c16_i32 = arith.constant 16 : i32
    %32 = vector.broadcast %c16_i32 : i32 to vector<32x8xi32>
    %33 = arith.addi %32, %31 : vector<32x8xi32>
    %c0_i32_14 = arith.constant 0 : i32
    %34 = vector.broadcast %c0_i32_14 : i32 to vector<32x8xi32>
    %35 = arith.addi %33, %34 : vector<32x8xi32>
    %36 = arith.cmpi eq, %2, %35 : vector<32x8xi32>
    %37 = arith.extui %36 : vector<32x8xi1> to vector<32x8xi32>
    %38 = arith.sitofp %37 : vector<32x8xi32> to vector<32x8xf32>
    %cst_15 = arith.constant dense<0.000000e+00> : vector<16x8xf32>
    %39 = tpu.matmul %1, %38, %cst_15 {dimension_numbers = #tpu.dot_dimension_numbers<[1], [0], [0], [1], [0, 0, 1, 1], [], []>} : vector<16x32xf32>, vector<32x8xf32>, vector<16x8xf32> -> vector<16x8xf32>
    %c0_16 = arith.constant 0 : index
    %c2 = arith.constant 2 : index
    %c0_17 = arith.constant 0 : index
    %c0_18 = arith.constant 0 : index
    %40 = vector.load %arg3[%c0_16, %c2, %c0_17, %c0_18] : memref<1x4x16x8xf32, #tpu.memory_space<vmem>>, vector<1x1x16x8xf32>
    %41 = vector.shape_cast %40 : vector<1x1x16x8xf32> to vector<16x8xf32>
    %42 = vector.shape_cast %39 : vector<16x8xf32> to vector<1x1x16x8xf32>
    tpu.vector_store %arg3[%c0_16, %c2, %c0_17, %c0_18], %42 {strides = array<i32>} : memref<1x4x16x8xf32, #tpu.memory_space<vmem>>, vector<1x1x16x8xf32>,
    %c2_i32_19 = arith.constant 2 : i32
    %43 = vector.broadcast %c2_i32_19 : i32 to vector<32x8xi32>
    %44 = arith.muli %3, %43 : vector<32x8xi32>
    %c16_i32_20 = arith.constant 16 : i32
    %45 = vector.broadcast %c16_i32_20 : i32 to vector<32x8xi32>
    %46 = arith.addi %45, %44 : vector<32x8xi32>
    %c1_i32_21 = arith.constant 1 : i32
    %47 = vector.broadcast %c1_i32_21 : i32 to vector<32x8xi32>
    %48 = arith.addi %46, %47 : vector<32x8xi32>
    %49 = arith.cmpi eq, %2, %48 : vector<32x8xi32>
    %50 = arith.extui %49 : vector<32x8xi1> to vector<32x8xi32>
    %51 = arith.sitofp %50 : vector<32x8xi32> to vector<32x8xf32>
    %cst_22 = arith.constant dense<0.000000e+00> : vector<16x8xf32>
    %52 = tpu.matmul %1, %51, %cst_22 {dimension_numbers = #tpu.dot_dimension_numbers<[1], [0], [0], [1], [0, 0, 1, 1], [], []>} : vector<16x32xf32>, vector<32x8xf32>, vector<16x8xf32> -> vector<16x8xf32>
    %c0_23 = arith.constant 0 : index
    %c3 = arith.constant 3 : index
    %c0_24 = arith.constant 0 : index
    %c0_25 = arith.constant 0 : index
    %53 = vector.load %arg3[%c0_23, %c3, %c0_24, %c0_25] : memref<1x4x16x8xf32, #tpu.memory_space<vmem>>, vector<1x1x16x8xf32>
    %54 = vector.shape_cast %53 : vector<1x1x16x8xf32> to vector<16x8xf32>
    %55 = vector.shape_cast %52 : vector<16x8xf32> to vector<1x1x16x8xf32>
    tpu.vector_store %arg3[%c0_23, %c3, %c0_24, %c0_25], %55 {strides = array<i32>} : memref<1x4x16x8xf32, #tpu.memory_space<vmem>>, vector<1x1x16x8xf32>,
    return
  }
  func.func @transform_0(%arg0: i32, %arg1: i32) -> (i32, i32, i32) {
    %c0_i32 = arith.constant 0 : i32
    %c0_i32_0 = arith.constant 0 : i32
    return %arg0, %arg1, %c0_i32 : i32, i32, i32
  }
  func.func @transform_1(%arg0: i32, %arg1: i32) -> (i32, i32, i32, i32) {
    %c0_i32 = arith.constant 0 : i32
    %c0_i32_0 = arith.constant 0 : i32
    %c0_i32_1 = arith.constant 0 : i32
    return %arg0, %c0_i32, %arg1, %c0_i32_0 : i32, i32, i32, i32
  }
}

</mosaic_0001>

<bundles_post_ra>
// kernel: tpu_custom_call.1
= control target key start
LH: loop header
LB: loop body
LE: loop exit
PB: predicated region body
PF: predicated region fallthrough
CT: control target
= control target key end

     0   :  { %6 = vsyncpa [#allocation3], 0  ;;  %s1233_s0 = inlined_call_operand.hbm [shape: f32[2,32,32], index: 0, kind: input, shape index: {}]   ;;  %s1234_s1 = inlined_call_operand.vmem [shape: f32[2,4,32,8], index: 1, kind: output, shape index: {}]  }
   0x1   :  { %8 = vsyncpa [#allocation3 + $0x1], 0  ;;  %s1031_s6 = smov 0   ;;  %s1033_s7 = smov 0  }
   0x2   :  { %s1035_s8 = smov 0   ;;  %s1037_s9 = smov 0  }
   0x3   :  { %s1039_s10 = smov 0   ;;  %s1041_s11 = smov 0  }
   0x4   :  { %s1043_s12 = smov 0   ;;  %s1045_s13 = smov 0  }
   0x5 LB: > { %s682_s14 = sadd.s32 4294967295, %s1015_s13   ;;  %s23_s15 = sadd.s32 1, %s1007_s11  ;;  %s1015_s13 = sphi %s1045_s13, %s14_s13   ;;  %s1011_s12 = sphi %s1043_s12, %s1251_s12   ;;  %s1007_s11 = sphi %s1041_s11, %s1250_s11   ;;  %s1003_s10 = sphi %s1039_s10, %s1249_s10   ;;  %s999_s9 = sphi %s1037_s9, %s1248_s9   ;;  %s995_s8 = sphi %s1035_s8, %s1247_s8   ;;  %s991_s7 = sphi %s1033_s7, %s1246_s7   ;;  %s987_s6 = sphi %s1031_s6, %s1245_s6  }
   0x6   : > { %p24_p0 = scmp.ge.s32.totalorder %s23_s15, 2  ;;  %s26_s16 = sadd.s32 1, %s1011_s12 }
   0x7   : > { %s35_s17 = sadd.s32 1, %s995_s8  ;;  %p42_p1 = scmp.ne.s32.totalorder %s995_s8, %s991_s7 }
   0x8   : > { %s1253_s15 = smov (%p24_p0, %s23_s15), 0  ;;  %s1255_s16 = smov (!%p24_p0, %s26_s16), %s1011_s12 }
   0x9   : > { %s31_s18 = ssub.s32 %s1007_s11, %s1253_s15  ;;  %p43_p2 = scmp.eq.s32.totalorder %s1015_s13, 0 }
   0xa   : > { %p28_p3 = scmp.ge.s32.totalorder %s1255_s16, 2  ;;  %p48_p4 = scmp.ne.s32.totalorder %s991_s7, %s987_s6 }
   0xb   : > { %p1085_p5 = por %p43_p2, %p42_p1  ;;  %p49_p6 = scmp.eq.s32.totalorder %s682_s14, 0 }
   0xc   : > { %s1257_s16 = smov (%p28_p3, %s1255_s16), 0  ;;  %p74_p8 = scmp.eq.s32.totalorder %s682_s14, 3 }
   0xd   : > { %p1091_p7 = por %p49_p6, %p48_p4  ;;  %s30_s21 = ssub.s32 %s1011_s12, %s1257_s16 }
   0xe   : > { %s32_s22 = sor.u32 %s31_s18, %s30_s21  ;;  %p1100_p9 = por %p74_p8, %p42_p1 }
   0xf   : > { %p33_p10 = scmp.eq.s32.totalorder %s32_s22, 0  ;;  %p851_p11 = scmp.lt.s32.totalorder %s1015_s13, 4 }
  0x10   : > { %s1237_s23 = scalar_select %p1100_p9, 1, 0 }
  0x11   : > { %s100_s24 = sand.u32 1, %s995_s8   ;;  %s687_s25 = sshll.u32 %s1007_s11, 1 }
  0x12   : > { %s1108_s26 = scalar_select %p33_p10, %s995_s8, %s35_s17  }
  0x13   : > { %s686_s27 = sshll.u32 %s100_s24, 4  ;;  %s688_s28 = sshll.u32 %s1011_s12, 2 }
  0x14   : > { %s110_s29 = sadd.s32 %s688_s28, %s687_s25  ;;  %s104_s30 = scalar_lea.vmem [#allocation2], %s686_s27 }
  0x15   : > { %s113_s2 = sshll.u32 %s104_s30, 4  ;;  %s689_s3 = sshll.u32 %s110_s29, 7  ;;  %s1111_s2 = int_to_ptr.vmem [resolvable:$true] %s113_s2 }
  0x16   : > { %s1116_s6 = scalar_lea.hbm %s1233_s0, %s689_s3  ;;  %p1120_p12 = pnand %p851_p11, %p1085_p5 }
  0x17   : > { %s1125_s17 = scalar_lea.sflag [#allocation3], %s100_s24  ;;  %s919_s18 = scalar_lea.hbm %s1116_s6, 256 }
  0x18   : > { %p920_p0 = scmp.ne.s32.totalorder %s1116_s6, %s919_s18  ;;  %p921_p1 = pneg %p1120_p12 }
  0x19   : > { %s924_s22 = scalar_lea.hbm %s1233_s0, 1024  ;;  %p925_p4 = scmp.lt.u32.totalorder %s1116_s6, %s1233_s0 }
  0x1a   : > { %p922_p2 = pnand %p921_p1, %p920_p0  ;;  %p926_p5 = scmp.lt.u32.totalorder %s924_s22, %s919_s18 }
  0x1b   : > { %p928_p8 = scmp.lt.u32.totalorder %s919_s18, %s1116_s6 }
  0x1c   : > { %p923_p3 = pneg %p922_p2  ;;  %p927_p6 = por %p926_p5, %p925_p4 }
  0x1e   : > { %p929_p10 = por %p928_p8, %p927_p6 }
  0x20   : > { %p930_p11 = pnand %p929_p10, %p923_p3 }
  0x22   : > { %933 = shalt.err (!%p930_p11)
}
  0x23   : > { %s934_s24 = scalar_lea.vmem %s1111_s2, 256  ;;  %s1017_s28 = smov [#allocation2]  }
  0x24   : > { %p935_p0 = scmp.ne.s32.totalorder %s1111_s2, %s934_s24  ;;  %s939_s29 = sshll.u32 %s1017_s28, 4  ;;  %s940_s29 = int_to_ptr.vmem [resolvable:$false] %s939_s29 }
  0x25   : > { %s941_s30 = scalar_lea.vmem %s940_s29, 512  ;;  %p942_p9 = scmp.lt.s32.totalorder %s1111_s2, %s940_s29 }
  0x26   : > { %p937_p2 = pnand %p935_p0, %p921_p1  ;;  %p943_p4 = scmp.lt.s32.totalorder %s941_s30, %s934_s24 }
  0x28   : > { %p938_p13 = pneg %p937_p2  ;;  %p944_p5 = por %p943_p4, %p942_p9 }
  0x2a   : > { %p945_p6 = pnand %p944_p5, %p938_p13 }
  0x2c   : > { %948 = shalt.err (!%p945_p6)
}
  0x2d   : > { %s1018_s3 = smov 128   ;;  %s1019_s4 = smov 8  }
  0x2e   : > { %850 = dma.hbm_to_vmem [thread:$0]  (!%p1120_p12), %s1116_s6, 256, %s1111_s2, %s1125_s17, %s1018_s3, %s1018_s3, %s1019_s4  }
  0x2f   : > { %p121_p1 = scmp.lt.s32.totalorder %s1015_s13, 5  ;;  %p1239_p3 = scmp.ge.s32.totalorder %s1015_s13, 1 }
  0x31   : > { %p122_p8 = pnand %p1239_p3, %p121_p1 }
  0x32   : > { %s1157_s5 = sand.u32 (!%p122_p8), 1, %s991_s7  }
  0x33   : > { %125 = sbr.rel (%p122_p8) target bundleno = 307 (0x133), region = 24  ;;  %s691_s18 = sshll.u32 (!%p122_p8), %s1157_s5, 4 }
  0x34   : > { %s128_s19 = scalar_lea.sflag (!%p122_p8), [#allocation3], %s1157_s5  ;;  %s1161_s21 = scalar_lea.vmem (!%p122_p8), [#allocation2], %s691_s18 }
  0x3a   : > { %982 = dma.done.wait (%p1091_p7), %s128_s19, 256  }
  0x3b   : > { %984 = vsyncadd (%p1091_p7), %s128_s19, 4294967040  ;;  %v153_v0 = vlaneseq  ;;  %vm173_vm0 = vcmask 261120   ;;  %v151_v8 = vld [vmem:[%s1161_s21] sm:$0xff]  ;;  %v1020_v10 = vmov 1.0|1.0   ;;  %v152_v14 = vld [vmem:[%s1161_s21 + $0x8] sm:$0xff] }
  0x3c   : > { %777 = vmatprep.mubr.msk.f32.mxu0 %vm173_vm0, %v151_v8  ;;  %788 = vmatprep.mubr.msk.f32.mxu1 %vm173_vm0, %v151_v8  ;;  %s692_s20 = sshll.u32 %s1157_s5, 6  ;;  %p1244_p7 = scmp.ne.s32.totalorder %s1237_s23, 0 }
  0x3d   : > { %v154_v1 = vshrl.u32 %v153_v0, 7  ;;  %v159_v2 = vand.u32 127, %v153_v0  ;;  %s148_s2 = scalar_lea.vmem [#allocation4], %s692_s20  ;;  %s740_s6 = sshll.u32 (%p1244_p7), %s999_s9, 1 }
  0x3e   : > { %s741_s14 = sshll.u32 (%p1244_p7), %s1003_s10, 4 }
  0x3f   : > { %v155_v3 = vadd.s32 8, %v154_v1  ;;  %v160_v4 = vmul.u32 2, %v159_v2  ;;  %v156_v5 = vadd.s32 16, %v154_v1  ;;  %v157_v6 = vadd.s32 24, %v154_v1  ;;  %s540_s17 = sadd.s32 (%p1244_p7), %s741_s14, %s740_s6 }
  0x40   : > { %s742_s22 = sshll.u32 (%p1244_p7), %s540_s17, 3 }
  0x41   : > { %vm161_vm1 = vcmp.eq.s32.totalorder %v154_v1, %v160_v4  ;;  %vm162_vm2 = vcmp.eq.s32.totalorder %v155_v3, %v160_v4  ;;  %v258_v7 = vadd.s32 1, %v160_v4  ;;  %vm163_vm3 = vcmp.eq.s32.totalorder %v156_v5, %v160_v4  ;;  %s542_s24 = scalar_lea.vmem (%p1244_p7), %s1234_s1, %s742_s22 }
  0x42   : > { %vm813_vm4 = vmpackc.low %vm162_vm2, %vm161_vm1  ;;  %vm164_vm5 = vcmp.eq.s32.totalorder %v157_v6, %v160_v4  ;;  %v349_v9 = vadd.s32 16, %v160_v4 }
  0x43   : > { %814 = vmatprep.subr.msk.bf16.mxu0 %vm813_vm4, %v1020_v10  ;;  %vm259_vm6 = vcmp.eq.s32.totalorder %v154_v1, %v258_v7  ;;  %vm260_vm7 = vcmp.eq.s32.totalorder %v155_v3, %v258_v7  ;;  %vm1168_vm8 = vmpackc.low %vm164_vm5, %vm163_vm3  ;;  %vm261_vm9 = vcmp.eq.s32.totalorder %v156_v5, %v258_v7  ;;  %vm262_vm10 = vcmp.eq.s32.totalorder %v157_v6, %v258_v7 }
  0x44   : > { %816 = vmatpush3.bf16.msk.msra.mxu0 %vm813_vm4, %v1020_v10  ;;  %vm821_vm11 = vmpackc.low %vm260_vm7, %vm259_vm6  ;;  %vm350_vm12 = vcmp.eq.s32.totalorder %v154_v1, %v349_v9  ;;  %vm351_vm13 = vcmp.eq.s32.totalorder %v155_v3, %v349_v9  ;;  %v440_v12 = vadd.s32 1, %v349_v9  ;;  %vm352_vm3 = vcmp.eq.s32.totalorder %v156_v5, %v349_v9 }
  0x45   : > { %822 = vmatprep.subr.msk.bf16.mxu1 %vm821_vm11, %v1020_v10  ;;  %818 = vmatprep.subr.msk.bf16.mxu0 %vm1168_vm8, %v1020_v10  ;;  %vm825_vm14 = vmpackc.low %vm262_vm10, %vm261_vm9  ;;  %vm353_vm4 = vcmp.eq.s32.totalorder %v157_v6, %v349_v9 }
  0x46   : > { %824 = vmatpush3.bf16.msk.msra.mxu1 %vm821_vm11, %v1020_v10  ;;  %vm1176_vm15 = vmpackc.low %vm351_vm13, %vm350_vm12  ;;  %vm441_vm1 = vcmp.eq.s32.totalorder %v154_v1, %v440_v12  ;;  %vm442_vm2 = vcmp.eq.s32.totalorder %v155_v3, %v440_v12  ;;  %vm443_vm6 = vcmp.eq.s32.totalorder %v156_v5, %v440_v12  ;;  %vm444_vm7 = vcmp.eq.s32.totalorder %v157_v6, %v440_v12 }
  0x47   : > { %826 = vmatprep.subr.msk.bf16.mxu1 %vm825_vm14, %v1020_v10  ;;  %vm837_vm5 = vmpackc.low %vm442_vm2, %vm441_vm1 }
  0x48   : > { %820 = vmatpush3.bf16.msk.msra.mxu0 %vm1168_vm8, %v1020_v10  ;;  %vm833_vm9 = vmpackc.low %vm353_vm4, %vm352_vm3  ;;  %vm255_vm8 = vcmask 64512  }
  0x49   : > { %830 = vmatprep.subr.msk.bf16.mxu0 %vm1176_vm15, %v1020_v10  ;;  %vm841_vm10 = vmpackc.low %vm444_vm7, %vm443_vm6 }
  0x4a   : > { %828 = vmatpush3.bf16.msk.msra.mxu1 %vm825_vm14, %v1020_v10 }
  0x4b   : > { %778 = vmatmul.mubr.msk.f32.vlgmr.msra.gmra.mrb[0].mxu0 %vm173_vm0, %v152_v14  ;;  %838 = vmatprep.subr.msk.bf16.mxu1 %vm837_vm5, %v1020_v10 }
  0x4c   : > { %832 = vmatpush3.bf16.msk.msra.mxu0 %vm1176_vm15, %v1020_v10  ;;  %799 = vmatprep.mubr.msk.f32.mxu0 %vm173_vm0, %v151_v8 }
  0x4d   : > { %789 = vmatmul.mubr.msk.f32.vlgmr.msra.gmra.mrb[0].mxu1 %vm173_vm0, %v152_v14  ;;  %834 = vmatprep.subr.msk.bf16.mxu0 %vm833_vm9, %v1020_v10 }
  0x4e   : > { %840 = vmatpush3.bf16.msk.msra.mxu1 %vm837_vm5, %v1020_v10  ;;  %810 = vmatprep.mubr.msk.f32.mxu1 %vm173_vm0, %v151_v8 }
  0x4f   : > { %842 = vmatprep.subr.msk.bf16.mxu1 %vm841_vm10, %v1020_v10 }
  0x50   : > { %836 = vmatpush3.bf16.msk.msra.mxu0 %vm833_vm9, %v1020_v10 }
  0x52   : > { %844 = vmatpush3.bf16.msk.msra.mxu1 %vm841_vm10, %v1020_v10 }
  0x53   : > { %800 = vmatmul.mubr.msk.f32.vlgmr.msra.gmra.mrb[2].mxu0 %vm173_vm0, %v152_v14 }
  0x55   : > { %811 = vmatmul.mubr.msk.f32.vlgmr.msra.gmra.mrb[2].mxu1 %vm173_vm0, %v152_v14 }
 0x11e   : > { %v779_v15 = vpop.f32.mrb[0].mxu0 }
 0x11f   : > { %257 = vst.msk [vmem:[%s148_s2 + $0x8] sm:$0xff] %vm255_vm8, %v779_v15  ;;  %v246_v16 = vpop.f32.mrb[1].mxu0 }
 0x120   : > { %v790_v17 = vpop.f32.mrb[0].mxu1  ;;  %256 = vst.msk [vmem:[%s148_s2] sm:$0xff] %vm255_vm8, %v246_v16 }
 0x121   : > { %714 = vst.msk [vmem:[%s148_s2 + $0x18] sm:$0xff] %vm255_vm8, %v790_v17  ;;  %v337_v18 = vpop.f32.mrb[1].mxu1 }
 0x122   : > { %713 = vst.msk [vmem:[%s148_s2 + $0x10] sm:$0xff] %vm255_vm8, %v337_v18 }
 0x124   : > { %537 = sbr.rel (!%p1244_p7) target bundleno = 307 (0x133), region = 32 }
 0x126   : > { %v801_v19 = vpop.f32.mrb[2].mxu0  ;;  %v586_v24 = vld [vmem:[%s148_s2 + $0x8] sm:$0xff] (%p1244_p7) }
 0x127   : > { %726 = vst.msk [vmem:[%s148_s2 + $0x28] sm:$0xff] %vm255_vm8, %v801_v19  ;;  %v428_v20 = vpop.f32.mrb[3].mxu0  ;;  %v584_v23 = vld [vmem:[%s148_s2] sm:$0xff] (%p1244_p7)  ;;  %587 = vst [vmem:[%s542_s24 + $0x8] sm:$0xff] (%p1244_p7), %v586_v24 }
 0x128   : > { %725 = vst.msk [vmem:[%s148_s2 + $0x20] sm:$0xff] %vm255_vm8, %v428_v20  ;;  %v812_v21 = vpop.f32.mrb[2].mxu1  ;;  %v590_v26 = vld [vmem:[%s148_s2 + $0x18] sm:$0xff] (%p1244_p7)  ;;  %585 = vst [vmem:[%s542_s24] sm:$0xff] (%p1244_p7), %v584_v23 }
 0x129   : > { %738 = vst.msk [vmem:[%s148_s2 + $0x38] sm:$0xff] %vm255_vm8, %v812_v21  ;;  %v519_v22 = vpop.f32.mrb[3].mxu1  ;;  %v588_v25 = vld [vmem:[%s148_s2 + $0x10] sm:$0xff] (%p1244_p7)  ;;  %591 = vst [vmem:[%s542_s24 + $0x28] sm:$0xff] (%p1244_p7), %v590_v26 }
 0x12a   : > { %737 = vst.msk [vmem:[%s148_s2 + $0x30] sm:$0xff] %vm255_vm8, %v519_v22  ;;  %589 = vst [vmem:[%s542_s24 + $0x20] sm:$0xff] (%p1244_p7), %v588_v25 }
 0x12e   : > { %v594_v28 = vld [vmem:[%s148_s2 + $0x28] sm:$0xff] }
 0x12f   : > { %v592_v27 = vld [vmem:[%s148_s2 + $0x20] sm:$0xff]  ;;  %595 = vst [vmem:[%s542_s24 + $0x48] sm:$0xff] %v594_v28 }
 0x130   : > { %v598_v30 = vld [vmem:[%s148_s2 + $0x38] sm:$0xff]  ;;  %593 = vst [vmem:[%s542_s24 + $0x40] sm:$0xff] %v592_v27 }
 0x131   : > { %v596_v29 = vld [vmem:[%s148_s2 + $0x30] sm:$0xff]  ;;  %599 = vst [vmem:[%s542_s24 + $0x68] sm:$0xff] %v598_v30 }
 0x132   : > { %597 = vst [vmem:[%s542_s24 + $0x60] sm:$0xff] %v596_v29 }
 0x133 PF: > { %s14_s13 = sadd.s32 1, %s1015_s13   ;;  %s1245_s6 = smov %s991_s7 }
 0x134   : > { %p11_p9 = scmp.ge.s32.totalorder %s14_s13, 6   ;;  %s1246_s7 = smov %s995_s8 }
 0x135   : > { %s1247_s8 = smov %s1108_s26  ;;  %s1248_s9 = smov %s1007_s11 }
 0x136   : > { %s1249_s10 = smov %s1011_s12  ;;  %s1250_s11 = smov %s1253_s15 }
 0x137   : > { %s1251_s12 = smov %s1257_s16  ;;  %13 = sbr.rel (!%p11_p9) target bundleno = 5 (0x5), region = 105 }
 0x13e   :  { %615 = vsyncpa [#allocation3], 1 }
 0x13f   :  { %617 = vsyncpa [#allocation3 + $0x1], 1 }

</bundles_post_ra>
